<compile_context>
chip_gen: v6e
topology: v6e:2x2x1
jax: 0.10.0
libtpu: 0.0.40
codegen_flags: <defaults>
</compile_context>

<pallas_src>
import functools

import jax
import jax.numpy as jnp
from jax import lax
from jax.experimental import pallas as pl
from jax.experimental.pallas import tpu as pltpu


def _round_up(x, m):
    return ((x + m - 1) // m) * m


def _embedding_gather_kernel(idx_ref, table_ref, out_ref, *, tile_n):
    # idx_ref  : SMEM (padded_N,) int32   scalar-prefetched indices
    # table_ref: VMEM (num_items, D)      whole table, resident across all steps
    # out_ref  : VMEM (tile_n, D)         dense output slab for this grid step
    base = pl.program_id(0) * tile_n

    def body(r, carry):
        idx = idx_ref[base + r]                       # scalar read from SMEM
        out_ref[pl.ds(r, 1), :] = table_ref[pl.ds(idx, 1), :]  # VMEM row copy
        return carry

    lax.fori_loop(0, tile_n, body, 0)


def item_embedding_forward(item_inputs, table, *, tile_n=256):
    """item_inputs: (B, S) int -> (B, S, D) gathered embeddings."""
    B, S = item_inputs.shape
    num_items, D = table.shape
    N = B * S

    # Clamp indices so the in-kernel dynamic slice never goes out of bounds
    # (nn.Embedding would raise; we defensively clamp).
    idx_flat = jnp.clip(item_inputs.reshape((N,)).astype(jnp.int32), 0, num_items - 1)

    # Sublane-dense tiles: multiple of 8 rows, large enough to amortize the
    # per-grid-step overhead, no larger than the (padded) problem.
    tile_n = max(8, min(tile_n, _round_up(N, 8)))
    padded_n = _round_up(N, tile_n)
    if padded_n != N:
        idx_flat = jnp.pad(idx_flat, (0, padded_n - N))  # pad with valid index 0
    num_tiles = padded_n // tile_n

    itemsize = table.dtype.itemsize
    table_bytes = num_items * D * itemsize
    out_tile_bytes = tile_n * D * itemsize
    # Resident table (single buffer) + double-buffered output slab + headroom.
    vmem_limit = int(min(max(table_bytes + 4 * out_tile_bytes + (2 << 20), 32 << 20),
                         100 << 20))

    cost = pl.CostEstimate(
        flops=0,
        transcendentals=0,
        bytes_accessed=table_bytes + padded_n * D * itemsize,  # read table once + write out
    )

    grid_spec = pltpu.PrefetchScalarGridSpec(
        num_scalar_prefetch=1,          # idx_flat lands in SMEM, feeds index_maps too
        grid=(num_tiles,),
        in_specs=[
            # Same block index every step -> table DMA'd HBM->VMEM once, stays resident.
            pl.BlockSpec((num_items, D), lambda i, idx_ref: (0, 0)),
        ],
        out_specs=pl.BlockSpec((tile_n, D), lambda i, idx_ref: (i, 0)),
    )

    out_flat = pl.pallas_call(
        functools.partial(_embedding_gather_kernel, tile_n=tile_n),
        grid_spec=grid_spec,
        out_shape=jax.ShapeDtypeStruct((padded_n, D), table.dtype),
        compiler_params=pltpu.CompilerParams(
            # Output tiles are disjoint -> legal to shard across TensorCores
            # (up to ~2x on v7x megacore; no effect on single-TC v5e/v6e).
            dimension_semantics=("parallel",),
            vmem_limit_bytes=vmem_limit,
        ),
        cost_estimate=cost,
    )(idx_flat, table)

    return out_flat[:N].reshape((B, S, D))


if __name__ == "__main__":
    num_items = 64
    embedding_dim = 128
    batch, seq = 2, 8

    key = jax.random.PRNGKey(0)
    k_idx, k_tab = jax.random.split(key)

    # Deterministic synthetic parameters (nn.Embedding default init ~ N(0, 1)).
    table = jax.random.normal(k_tab, (num_items, embedding_dim), dtype=jnp.float32)
    item_inputs = jax.random.randint(
        k_idx, (batch, seq), minval=0, maxval=num_items, dtype=jnp.int32
    )

    out = item_embedding_forward(item_inputs, table)
    out = jax.block_until_ready(out)

    # Reference check against plain JAX gather.
    ref = table[item_inputs]
    assert out.shape == (batch, seq, embedding_dim)
    assert jnp.allclose(out, ref), "Pallas embedding gather mismatch"

    print("KERNEL_OK")
</pallas_src>

<mosaic_0001>
module attributes {stable_mosaic.version = 11 : i64} {
  func.func @_embedding_gather_kernel(%arg0: i32, %arg1: memref<16xi32, #tpu.memory_space<smem>>, %arg2: memref<64x128xf32, #tpu.memory_space<vmem>>, %arg3: memref<16x128xf32, #tpu.memory_space<vmem>>) attributes {dimension_semantics = [#tpu.dimension_semantics<parallel>], iteration_bounds = array<i64: 1>, scalar_prefetch = 1 : i64, scratch_operands = 0 : i64, tpu.core_type = #tpu.core_type<tc>, window_params = [{pipeline_mode = #tpu.pipeline_mode<synchronous>, transform_indices = @transform_0, window_bounds = array<i64: 64, 128>}, {transform_indices = @transform_1, window_bounds = array<i64: 16, 128>}]} {
    %c16_i32 = arith.constant 16 : i32
    %0 = arith.muli %arg0, %c16_i32 : i32
    %c0_i32 = arith.constant 0 : i32
    %c16_i32_0 = arith.constant 16 : i32
    %1 = arith.addi %c0_i32, %c16_i32_0 : i32
    %c1_i32 = arith.constant 1 : i32
    scf.for %arg4 = %c0_i32 to %1 step %c1_i32  : i32 {
      %2 = arith.addi %0, %arg4 : i32
      %3 = arith.index_cast %2 : i32 to index
      %4 = memref.load %arg1[%3] : memref<16xi32, #tpu.memory_space<smem>>
      %5 = arith.index_cast %4 : i32 to index
      %c0 = arith.constant 0 : index
      %6 = vector.load %arg2[%5, %c0] : memref<64x128xf32, #tpu.memory_space<vmem>>, vector<1x128xf32>
      %7 = arith.index_cast %arg4 : i32 to index
      %c0_2 = arith.constant 0 : index
      %8 = vector.load %arg3[%7, %c0_2] : memref<16x128xf32, #tpu.memory_space<vmem>>, vector<1x128xf32>
      tpu.vector_store %arg3[%7, %c0_2], %6 {strides = array<i32>} : memref<16x128xf32, #tpu.memory_space<vmem>>, vector<1x128xf32>,
    }
    %c16_i32_1 = arith.constant 16 : i32
    return
  }
  func.func @transform_0(%arg0: i32, %arg1: memref<16xi32, #tpu.memory_space<smem>>) -> (i32, i32) {
    %c0_i32 = arith.constant 0 : i32
    %c0_i32_0 = arith.constant 0 : i32
    %c0_i32_1 = arith.constant 0 : i32
    return %c0_i32, %c0_i32_0 : i32, i32
  }
  func.func @transform_1(%arg0: i32, %arg1: memref<16xi32, #tpu.memory_space<smem>>) -> (i32, i32) {
    %c0_i32 = arith.constant 0 : i32
    %c0_i32_0 = arith.constant 0 : i32
    return %arg0, %c0_i32 : i32, i32
  }
}

</mosaic_0001>

<bundles_post_ra>
// kernel: tpu_custom_call.1
= control target key start
LH: loop header
LB: loop body
LE: loop exit
PB: predicated region body
PF: predicated region fallthrough
CT: control target
= control target key end

     0   :  { %s140_s9 = smov [#allocation3]   ;;  %s175_s0 = inlined_call_operand.hbm [shape: s32[16], index: 0, kind: input, shape index: {}]   ;;  %s176_s1 = inlined_call_operand.hbm [shape: f32[64,128], index: 1, kind: input, shape index: {}]   ;;  %s177_s2 = inlined_call_operand.hbm [shape: f32[16,128], index: 2, kind: output, shape index: {}]  }
   0x1   :  { %8 = dma.hbm_to_smem %s175_s0, 16, %s140_s9, [#allocation2] }
   0x2   :  { %130 = dma.done.wait [#allocation2], 16 }
   0x3   :  { %131 = vsyncadd [#allocation2], 4294967280 }
   0x4   :  { %10 = sfence }
   0x5   :  { %11 = vsyncpa [#allocation5], 0 }
   0x6   :  { %12 = vsyncpa [#allocation6], 0  ;;  %s141_s12 = smov [#allocation4]  }
   0x7   :  { %s18_s13 = sshll.u32 %s141_s12, 4  ;;  %s19_s13 = int_to_ptr.vmem [resolvable:$true] %s18_s13 }
   0x8   :  { %s94_s14 = scalar_lea.vmem %s19_s13, 1024  ;;  %p99_p1 = scmp.lt.s32.totalorder %s19_s13, %s19_s13 }
   0x9   :  { %p95_p0 = scmp.ne.s32.totalorder %s19_s13, %s94_s14  ;;  %p100_p2 = scmp.lt.s32.totalorder %s94_s14, %s94_s14 }
   0xb   :  { %p101_p3 = por %p100_p2, %p99_p1 }
   0xd   :  { %p102_p4 = pnand %p101_p3, %p95_p0 }
   0xf   :  { %105 = shalt.err (!%p102_p4)
}
  0x10   :  { %s142_s15 = smov 128   ;;  %s143_s16 = smov 8  }
  0x11   :  { %24 = dma.hbm_to_vmem [thread:$0]  %s176_s1, 1024, %s19_s13, [#allocation5], %s142_s15, %s142_s15, %s143_s16  }
  0x12   :  { %132 = dma.done.wait [#allocation5], 1024  }
  0x13   :  { %133 = vsyncadd [#allocation5], 4294966272  ;;  %s136_s18 = smov 0  }
  0x14 LB: > { %s36_s19 = sld [smem:[#allocation3 + %s138_s18]]  ;;  %s39_s21 = scalar_lea.vmem [#allocation7], %s138_s18  ;;  %s138_s18 = sphi %s136_s18, %s34_s18  }
  0x15   : > { %s34_s18 = sadd.s32 1, %s138_s18  }
  0x16   : > { %p31_p5 = scmp.ge.s32.totalorder %s34_s18, 16  }
  0x17   :  { %s144_s22 = smov (%p31_p5), [#allocation7]  }
  0x18   :  { %33 = sbr.rel (!%p31_p5) target bundleno = 20 (0x14), region = 37  ;;  %s46_s23 = sshll.u32 (%p31_p5), %s144_s22, 4  ;;  %s47_s23 = int_to_ptr.vmem [resolvable:$true] %s46_s23 }
  0x19   :  { %s106_s24 = scalar_lea.vmem (%p31_p5), %s47_s23, 256  ;;  %p111_p7 = scmp.lt.s32.totalorder (%p31_p5), %s47_s23, %s47_s23 }
  0x1a   : > { %s37_s20 = scalar_lea.vmem [#allocation4], %s36_s19  ;;  %p107_p6 = scmp.ne.s32.totalorder (%p31_p5), %s47_s23, %s106_s24 }
  0x1b   : > { %v38_v0 = vld [vmem:[%s37_s20] sm:$0x1]  ;;  %p112_p8 = scmp.lt.s32.totalorder (%p31_p5), %s106_s24, %s106_s24 }
  0x1c   : > { %40 = vst [vmem:[%s39_s21] sm:$0x1] %v38_v0 }
  0x1d   :  { %p113_p9 = por %p112_p8, %p111_p7 }
  0x1f   :  { %p114_p10 = pnand %p113_p9, %p107_p6 }
  0x21   :  { %117 = shalt.err (!%p114_p10)
}
  0x22   :  { %52 = dma.vmem_to_hbm [thread:$0]  %s47_s23, 256, %s177_s2, [#allocation6], %s142_s15, %s142_s15, %s143_s16  }
  0x23   :  { %134 = dma.done.wait [#allocation6], 256  }
  0x24   :  { %135 = vsyncadd [#allocation6], 4294967040 }
  0x25   :  { %56 = vsyncpa [#allocation5], 1 }
  0x26   :  { %57 = vsyncpa [#allocation6], 1 }

</bundles_post_ra>
